<compile_context>
chip_gen: v5e
topology: v5e:2x2
jax: 0.10.0
libtpu: 0.0.40
codegen_flags: <defaults>
</compile_context>

<pallas_src>
import functools

import jax
import jax.numpy as jnp
import numpy as np
from jax.experimental import pallas as pl
from jax.experimental.pallas import tpu as pltpu

_COMPUTE_DTYPE = jnp.bfloat16     # explicit MXU operand dtype (never inherited)


def _vmem_budgets():
    """Generation-aware VMEM budgets (v7x: 64 MiB/TC; v5e/v6e: 128 MiB)."""
    try:
        cap = int(pltpu.get_tpu_info().vmem_capacity_bytes)
    except Exception:
        cap = 64 * 1024 * 1024            # conservative (v7x-class) default
    if cap > 80 * 1024 * 1024:            # v5e / v6e class
        limit = 96 * 1024 * 1024
    else:                                  # v7x class
        limit = 40 * 1024 * 1024
    fused_budget = int(limit * 0.7)
    return cap, limit, fused_budget


_VMEM_CAP, _VMEM_LIMIT_BYTES, _FUSED_VMEM_BUDGET = _vmem_budgets()


def _pick_tile(dim, candidates):
    """Largest candidate that evenly divides dim (falls back to full dim)."""
    for c in candidates:
        if dim % c == 0:
            return c
    return dim


# -----------------------------------------------------------------------------
# Path 1: whole-MLP fusion (single pallas_call, activation resident in VMEM).
# -----------------------------------------------------------------------------
def _fused_mlp_kernel(*refs, num_layers):
    """refs = (x_ref, w0, s0, w1, s1, ..., w_{L-1}, s_{L-1}, o_ref)."""
    x_ref = refs[0]
    o_ref = refs[-1]
    h = x_ref[...].astype(jnp.float32)
    for i in range(num_layers):
        w_ref = refs[1 + 2 * i]
        s_ref = refs[2 + 2 * i]
        # bf16 operands on the MXU, f32 accumulation; epilogue stays in f32.
        h = jnp.dot(h.astype(_COMPUTE_DTYPE),
                    w_ref[...].astype(_COMPUTE_DTYPE),
                    preferred_element_type=jnp.float32)
        h = h + s_ref[...]
        if i < num_layers - 1:
            h = jnp.maximum(h, 0.0)
    o_ref[...] = h.astype(o_ref.dtype)


def mlp_fused_forward(x2d, folded, output_dim, *, tm):
    """x2d: (M, D); folded: list of (W'(in,out) bf16, shift'(out,) f32)."""
    M, D = x2d.shape
    num_layers = len(folded)

    in_specs = [pl.BlockSpec((tm, D), lambda i: (i, 0))]
    args = [x2d]
    for w, s in folded:
        k_in, k_out = w.shape
        in_specs.append(pl.BlockSpec((k_in, k_out), lambda i: (0, 0)))
        in_specs.append(pl.BlockSpec((1, k_out), lambda i: (0, 0)))
        args.append(w)
        args.append(s.reshape(1, k_out))

    kernel = functools.partial(_fused_mlp_kernel, num_layers=num_layers)

    return pl.pallas_call(
        kernel,
        out_shape=jax.ShapeDtypeStruct((M, output_dim), x2d.dtype),
        grid_spec=pltpu.PrefetchScalarGridSpec(
            num_scalar_prefetch=0,
            grid=(M // tm,),
            in_specs=in_specs,
            out_specs=pl.BlockSpec((tm, output_dim), lambda i: (i, 0)),
        ),
        compiler_params=pltpu.CompilerParams(
            dimension_semantics=("parallel",),
            vmem_limit_bytes=_VMEM_LIMIT_BYTES),
    )(*args)


# -----------------------------------------------------------------------------
# Path 2: per-layer tiled matmul (fallback for very large shapes).
# -----------------------------------------------------------------------------
def _linear_kernel_accout(x_ref, w_ref, s_ref, o_ref, *, relu):
    """f32 output: accumulate the K-reduction directly into o_ref (no scratch)."""
    k = pl.program_id(2)

    @pl.when(k == 0)
    def _():
        o_ref[...] = jnp.zeros_like(o_ref)

    o_ref[...] += jnp.dot(x_ref[...].astype(_COMPUTE_DTYPE), w_ref[...],
                          preferred_element_type=jnp.float32)

    @pl.when(k == pl.num_programs(2) - 1)
    def _():
        y = o_ref[...] + s_ref[...]            # (tm, tn) + (1, tn)
        if relu:
            y = jnp.maximum(y, 0.0)
        o_ref[...] = y


def _linear_kernel_scratch(x_ref, w_ref, s_ref, o_ref, acc_ref, *, relu):
    """Narrow output dtype: accumulate in a f32 VMEM scratch, cast at the end."""
    k = pl.program_id(2)

    @pl.when(k == 0)
    def _():
        acc_ref[...] = jnp.zeros_like(acc_ref)

    acc_ref[...] += jnp.dot(x_ref[...].astype(_COMPUTE_DTYPE), w_ref[...],
                            preferred_element_type=jnp.float32)

    @pl.when(k == pl.num_programs(2) - 1)
    def _():
        y = acc_ref[...] + s_ref[...]
        if relu:
            y = jnp.maximum(y, 0.0)
        o_ref[...] = y.astype(o_ref.dtype)


def fused_linear(x, w, shift, *, relu, tm=None, tn=None, tk=None):
    """y = act(x @ w + shift), x: (M, K), w: (K, N) bf16, shift: (N,) f32."""
    M, K = x.shape
    Kw, N = w.shape
    assert K == Kw
    big_vmem = _VMEM_CAP > 80 * 1024 * 1024
    if tm is None:
        tm = _pick_tile(M, (512, 256, 128, 64, 32, 16, 8))
    if tn is None:
        tn = _pick_tile(N, (512, 256, 128) if big_vmem else (256, 128))
    if tk is None:
        tk = _pick_tile(K, (1024, 512, 256, 128) if big_vmem else (512, 256, 128))
    assert M % tm == 0 and K % tk == 0 and N % tn == 0, "pick aligned shapes"

    s2 = shift.reshape(1, N).astype(jnp.float32)
    out_f32 = (x.dtype == jnp.float32)
    if out_f32:
        kernel = functools.partial(_linear_kernel_accout, relu=relu)
        scratch_shapes = []
    else:
        kernel = functools.partial(_linear_kernel_scratch, relu=relu)
        scratch_shapes = [pltpu.VMEM((tm, tn), jnp.float32)]

    return pl.pallas_call(
        kernel,
        out_shape=jax.ShapeDtypeStruct((M, N), x.dtype),
        grid_spec=pltpu.PrefetchScalarGridSpec(
            num_scalar_prefetch=0,
            grid=(M // tm, N // tn, K // tk),
            in_specs=[
                pl.BlockSpec((tm, tk), lambda i, j, k: (i, k)),  # x tile
                pl.BlockSpec((tk, tn), lambda i, j, k: (k, j)),  # w tile (bf16)
                pl.BlockSpec((1, tn), lambda i, j, k: (0, j)),   # folded shift
            ],
            out_specs=pl.BlockSpec((tm, tn), lambda i, j, k: (i, j)),
            scratch_shapes=scratch_shapes,
        ),
        compiler_params=pltpu.CompilerParams(
            dimension_semantics=("parallel", "parallel", "arbitrary"),
            vmem_limit_bytes=_VMEM_LIMIT_BYTES),
    )(x, w, s2)


# -----------------------------------------------------------------------------
# Parameter handling / forward.
# -----------------------------------------------------------------------------
def init_mlp_params(key, input_dim, hidden_dim, output_dim, num_layers,
                    eps=1e-5, dtype=jnp.float32):
    """Deterministic parameter init mirroring the module's shapes (eval-mode BN)."""
    h = [hidden_dim] * (num_layers - 1)
    in_dims = [input_dim] + h
    out_dims = h + [output_dim]

    params = []
    for li, (n_in, n_out) in enumerate(zip(in_dims, out_dims)):
        key, kw, kb, kg, kbeta, km, kv = jax.random.split(key, 7)
        bound = 1.0 / np.sqrt(n_in)
        w = jax.random.uniform(kw, (n_in, n_out), dtype, -bound, bound)
        b = jax.random.uniform(kb, (n_out,), dtype, -bound, bound)

        if li < num_layers - 1:
            gamma = 1.0 + 0.1 * jax.random.normal(kg, (n_out,), dtype)
            beta = 0.1 * jax.random.normal(kbeta, (n_out,), dtype)
            run_mean = 0.1 * jax.random.normal(km, (n_out,), dtype)
            run_var = 1.0 + 0.1 * jax.random.uniform(kv, (n_out,), dtype)
            scale = gamma / jnp.sqrt(run_var + eps)
            shift = beta - run_mean * scale
        else:
            scale = jnp.ones((n_out,), dtype)
            shift = jnp.zeros((n_out,), dtype)

        params.append(dict(w=w, b=b, scale=scale, shift=shift))
    return params


def fold_params(params, compute_dtype=_COMPUTE_DTYPE):
    """Fold eval BN + bias into (W' [compute_dtype], shift' [f32]) — done ONCE."""
    folded = []
    for p in params:
        scale = p["scale"].astype(jnp.float32)
        w = (p["w"].astype(jnp.float32) * scale[None, :]).astype(compute_dtype)
        shift = scale * p["b"].astype(jnp.float32) + p["shift"].astype(jnp.float32)
        folded.append((w, shift))
    return folded


def _fused_fits_vmem(tm, dims, w_itemsize=2):
    """Conservative: double-buffered f32 act tiles + double-buffered bf16 weights."""
    act_bytes = 2 * 2 * tm * max(dims) * 4
    w_bytes = sum(2 * (d_in * d_out * w_itemsize + d_out * 4)
                  for d_in, d_out in zip(dims[:-1], dims[1:]))
    return act_bytes + w_bytes < _FUSED_VMEM_BUDGET


def mlp_forward(x, folded, output_dim):
    """x: (B, N, D), folded = fold_params(params) -> (B, N, output_dim)."""
    B, N, D = x.shape
    M = B * N
    h = x.reshape(M, D)

    dims = [D] + [w.shape[1] for (w, _) in folded]
    num_layers = len(folded)

    if _VMEM_CAP > 80 * 1024 * 1024:                 # v5e / v6e (128 MiB VMEM)
        tm_cands = (512, 256, 128, 64, 32, 16, 8)
        if max(dims) <= 256:
            tm_cands = (1024,) + tm_cands
    else:                                             # v7x-class (64 MiB / TC)
        tm_cands = (256, 128, 64, 32, 16, 8)
    tm = _pick_tile(M, tm_cands)
    # Keep >= 2 grid steps so the "parallel" axis can feed both TensorCores on
    # v7x; never shrink below 128 rows per tile.
    while (M // tm) < 2 and tm >= 256:
        tm //= 2

    if _fused_fits_vmem(tm, dims):
        out = mlp_fused_forward(h, folded, output_dim, tm=tm)
    else:
        # TODO(synk): replace with a weights-streamed, activation-resident
        # kernel (VMEM ping-pong activations + K-tiled weight pipeline) to
        # avoid intermediate-activation HBM round trips at very large shapes.
        for i, (w, s) in enumerate(folded):
            h = fused_linear(h, w, s, relu=(i < num_layers - 1))
        out = h
    return out.reshape(B, N, output_dim)


def mlp_reference(x, params, output_dim):
    """Plain-JAX f32 reference following the original (unfolded) module math."""
    B, N, D = x.shape
    h = x.reshape(B * N, D)
    num_layers = len(params)
    for i, p in enumerate(params):
        y = h @ p["w"] + p["b"]
        y = y * p["scale"] + p["shift"]
        if i < num_layers - 1:
            y = jnp.maximum(y, 0.0)
        h = y
    return h.reshape(B, N, output_dim)


if __name__ == "__main__":
    # Small, TPU-tile-aligned shapes: B*N and feature dims are multiples of
    # (8, 128) so full MXU tiles are used without padding.
    B, N = 2, 64
    input_dim, hidden_dim, output_dim, num_layers = 128, 256, 128, 3

    key = jax.random.PRNGKey(0)
    kx, kp = jax.random.split(key)
    x = jax.random.normal(kx, (B, N, input_dim), jnp.float32)
    params = init_mlp_params(kp, input_dim, hidden_dim, output_dim, num_layers)

    # Fold eval-mode BN + bias into bf16 weights ONCE (hoisted out of forward).
    folded = fold_params(params)

    ref = mlp_reference(x, params, output_dim)

    # Path 1: fully fused single-kernel MLP (used automatically at these shapes).
    out = jax.block_until_ready(mlp_forward(x, folded, output_dim))
    assert out.shape == (B, N, output_dim)
    # bf16 MXU operands -> loosened tolerance vs. the f32 reference.
    np.testing.assert_allclose(np.asarray(out), np.asarray(ref),
                               rtol=5e-2, atol=5e-2)

    # Path 2: also validate the tiled per-layer fallback kernel.
    h = x.reshape(B * N, input_dim)
    for i, (w, s) in enumerate(folded):
        h = fused_linear(h, w, s, relu=(i < num_layers - 1))
    out2 = jax.block_until_ready(h.reshape(B, N, output_dim))
    np.testing.assert_allclose(np.asarray(out2), np.asarray(ref),
                               rtol=5e-2, atol=5e-2)

    print("KERNEL_OK")
</pallas_src>

<mosaic_0001>
module attributes {stable_mosaic.version = 11 : i64} {
  func.func @_fused_mlp_kernel(%arg0: i32, %arg1: memref<128x128xf32, #tpu.memory_space<vmem>>, %arg2: memref<128x256xbf16, #tpu.memory_space<vmem>>, %arg3: memref<1x256xf32, #tpu.memory_space<vmem>>, %arg4: memref<256x256xbf16, #tpu.memory_space<vmem>>, %arg5: memref<1x256xf32, #tpu.memory_space<vmem>>, %arg6: memref<256x128xbf16, #tpu.memory_space<vmem>>, %arg7: memref<1x128xf32, #tpu.memory_space<vmem>>, %arg8: memref<128x128xf32, #tpu.memory_space<vmem>>) attributes {dimension_semantics = [#tpu.dimension_semantics<parallel>], iteration_bounds = array<i64: 1>, scalar_prefetch = 0 : i64, scratch_operands = 0 : i64, tpu.core_type = #tpu.core_type<tc>, window_params = [{transform_indices = @transform_0, window_bounds = array<i64: 128, 128>}, {pipeline_mode = #tpu.pipeline_mode<synchronous>, transform_indices = @transform_1, window_bounds = array<i64: 128, 256>}, {pipeline_mode = #tpu.pipeline_mode<synchronous>, transform_indices = @transform_2, window_bounds = array<i64: 1, 256>}, {pipeline_mode = #tpu.pipeline_mode<synchronous>, transform_indices = @transform_3, window_bounds = array<i64: 256, 256>}, {pipeline_mode = #tpu.pipeline_mode<synchronous>, transform_indices = @transform_4, window_bounds = array<i64: 1, 256>}, {pipeline_mode = #tpu.pipeline_mode<synchronous>, transform_indices = @transform_5, window_bounds = array<i64: 256, 128>}, {pipeline_mode = #tpu.pipeline_mode<synchronous>, transform_indices = @transform_6, window_bounds = array<i64: 1, 128>}, {transform_indices = @transform_7, window_bounds = array<i64: 128, 128>}]} {
    %c0 = arith.constant 0 : index
    %c0_0 = arith.constant 0 : index
    %0 = vector.load %arg1[%c0, %c0_0] : memref<128x128xf32, #tpu.memory_space<vmem>>, vector<128x128xf32>
    %1 = arith.truncf %0 : vector<128x128xf32> to vector<128x128xbf16>
    %c0_1 = arith.constant 0 : index
    %c0_2 = arith.constant 0 : index
    %2 = vector.load %arg2[%c0_1, %c0_2] : memref<128x256xbf16, #tpu.memory_space<vmem>>, vector<128x256xbf16>
    %cst = arith.constant dense<0.000000e+00> : vector<128x256xf32>
    %3 = tpu.matmul %1, %2, %cst {dimension_numbers = #tpu.dot_dimension_numbers<[1], [0], [0], [1], [0, 0, 1, 1], [], []>} : vector<128x128xbf16>, vector<128x256xbf16>, vector<128x256xf32> -> vector<128x256xf32>
    %c0_3 = arith.constant 0 : index
    %c0_4 = arith.constant 0 : index
    %4 = vector.load %arg3[%c0_3, %c0_4] : memref<1x256xf32, #tpu.memory_space<vmem>>, vector<1x256xf32>
    %5 = vector.broadcast %4 : vector<1x256xf32> to vector<128x256xf32>
    %6 = arith.addf %3, %5 : vector<128x256xf32>
    %cst_5 = arith.constant 0.000000e+00 : f32
    %7 = vector.broadcast %cst_5 : f32 to vector<128x256xf32>
    %8 = arith.maximumf %6, %7 : vector<128x256xf32>
    %9 = arith.truncf %8 : vector<128x256xf32> to vector<128x256xbf16>
    %c0_6 = arith.constant 0 : index
    %c0_7 = arith.constant 0 : index
    %10 = vector.load %arg4[%c0_6, %c0_7] : memref<256x256xbf16, #tpu.memory_space<vmem>>, vector<256x256xbf16>
    %cst_8 = arith.constant dense<0.000000e+00> : vector<128x256xf32>
    %11 = tpu.matmul %9, %10, %cst_8 {dimension_numbers = #tpu.dot_dimension_numbers<[1], [0], [0], [1], [0, 0, 1, 1], [], []>} : vector<128x256xbf16>, vector<256x256xbf16>, vector<128x256xf32> -> vector<128x256xf32>
    %c0_9 = arith.constant 0 : index
    %c0_10 = arith.constant 0 : index
    %12 = vector.load %arg5[%c0_9, %c0_10] : memref<1x256xf32, #tpu.memory_space<vmem>>, vector<1x256xf32>
    %13 = vector.broadcast %12 : vector<1x256xf32> to vector<128x256xf32>
    %14 = arith.addf %11, %13 : vector<128x256xf32>
    %cst_11 = arith.constant 0.000000e+00 : f32
    %15 = vector.broadcast %cst_11 : f32 to vector<128x256xf32>
    %16 = arith.maximumf %14, %15 : vector<128x256xf32>
    %17 = arith.truncf %16 : vector<128x256xf32> to vector<128x256xbf16>
    %c0_12 = arith.constant 0 : index
    %c0_13 = arith.constant 0 : index
    %18 = vector.load %arg6[%c0_12, %c0_13] : memref<256x128xbf16, #tpu.memory_space<vmem>>, vector<256x128xbf16>
    %cst_14 = arith.constant dense<0.000000e+00> : vector<128x128xf32>
    %19 = tpu.matmul %17, %18, %cst_14 {dimension_numbers = #tpu.dot_dimension_numbers<[1], [0], [0], [1], [0, 0, 1, 1], [], []>} : vector<128x256xbf16>, vector<256x128xbf16>, vector<128x128xf32> -> vector<128x128xf32>
    %c0_15 = arith.constant 0 : index
    %c0_16 = arith.constant 0 : index
    %20 = vector.load %arg7[%c0_15, %c0_16] : memref<1x128xf32, #tpu.memory_space<vmem>>, vector<1x128xf32>
    %21 = vector.broadcast %20 : vector<1x128xf32> to vector<128x128xf32>
    %22 = arith.addf %19, %21 : vector<128x128xf32>
    %c0_17 = arith.constant 0 : index
    %c0_18 = arith.constant 0 : index
    %23 = vector.load %arg8[%c0_17, %c0_18] : memref<128x128xf32, #tpu.memory_space<vmem>>, vector<128x128xf32>
    tpu.vector_store %arg8[%c0_17, %c0_18], %22 {strides = array<i32>} : memref<128x128xf32, #tpu.memory_space<vmem>>, vector<128x128xf32>,
    return
  }
  func.func @transform_0(%arg0: i32) -> (i32, i32) {
    %c0_i32 = arith.constant 0 : i32
    %c0_i32_0 = arith.constant 0 : i32
    return %arg0, %c0_i32 : i32, i32
  }
  func.func @transform_1(%arg0: i32) -> (i32, i32) {
    %c0_i32 = arith.constant 0 : i32
    %c0_i32_0 = arith.constant 0 : i32
    %c0_i32_1 = arith.constant 0 : i32
    return %c0_i32, %c0_i32_0 : i32, i32
  }
  func.func @transform_2(%arg0: i32) -> (i32, i32) {
    %c0_i32 = arith.constant 0 : i32
    %c0_i32_0 = arith.constant 0 : i32
    %c0_i32_1 = arith.constant 0 : i32
    return %c0_i32, %c0_i32_0 : i32, i32
  }
  func.func @transform_3(%arg0: i32) -> (i32, i32) {
    %c0_i32 = arith.constant 0 : i32
    %c0_i32_0 = arith.constant 0 : i32
    %c0_i32_1 = arith.constant 0 : i32
    return %c0_i32, %c0_i32_0 : i32, i32
  }
  func.func @transform_4(%arg0: i32) -> (i32, i32) {
    %c0_i32 = arith.constant 0 : i32
    %c0_i32_0 = arith.constant 0 : i32
    %c0_i32_1 = arith.constant 0 : i32
    return %c0_i32, %c0_i32_0 : i32, i32
  }
  func.func @transform_5(%arg0: i32) -> (i32, i32) {
    %c0_i32 = arith.constant 0 : i32
    %c0_i32_0 = arith.constant 0 : i32
    %c0_i32_1 = arith.constant 0 : i32
    return %c0_i32, %c0_i32_0 : i32, i32
  }
  func.func @transform_6(%arg0: i32) -> (i32, i32) {
    %c0_i32 = arith.constant 0 : i32
    %c0_i32_0 = arith.constant 0 : i32
    %c0_i32_1 = arith.constant 0 : i32
    return %c0_i32, %c0_i32_0 : i32, i32
  }
  func.func @transform_7(%arg0: i32) -> (i32, i32) {
    %c0_i32 = arith.constant 0 : i32
    %c0_i32_0 = arith.constant 0 : i32
    return %arg0, %c0_i32 : i32, i32
  }
}

</mosaic_0001>

<bundles_post_ra>
// kernel: tpu_custom_call.1
= control target key start
LH: loop header
LB: loop body
LE: loop exit
PB: predicated region body
PF: predicated region fallthrough
CT: control target
= control target key end

     0   :  { %12 = vsyncpa [#allocation3], 0  ;;  %s1743_s0 = inlined_call_operand.hbm [shape: f32[128,128], index: 0, kind: input, shape index: {}]   ;;  %s1744_s1 = inlined_call_operand.hbm [shape: bf16[128,256], index: 1, kind: input, shape index: {}]   ;;  %s1745_s2 = inlined_call_operand.hbm [shape: f32[1,256], index: 2, kind: input, shape index: {}]   ;;  %s1746_s3 = inlined_call_operand.hbm [shape: bf16[256,256], index: 3, kind: input, shape index: {}]   ;;  %s1747_s4 = inlined_call_operand.vmem [shape: f32[1,256], index: 4, kind: input, shape index: {}]   ;;  %s1748_s5 = inlined_call_operand.hbm [shape: bf16[256,128], index: 5, kind: input, shape index: {}]   ;;  %s1749_s6 = inlined_call_operand.vmem [shape: f32[1,128], index: 6, kind: input, shape index: {}]   ;;  %s1750_s7 = inlined_call_operand.hbm [shape: f32[128,128], index: 7, kind: output, shape index: {}]  }
   0x1   :  { %13 = vsyncpa [#allocation6], 0 }
   0x2   :  { %14 = vsyncpa [#allocation9], 0 }
   0x3   :  { %15 = vsyncpa [#allocation4], 0  ;;  %s33_s26 = sshll.u32 %s1744_s1, 4  ;;  %s1567_s27 = smov [#allocation5]   ;;  %s34_s26 = int_to_ptr.hbm [resolvable:$true] %s33_s26 }
   0x4   :  { %s35_s28 = sshll.u32 %s1567_s27, 4  ;;  %s57_s8 = sshll.u32 %s1746_s3, 4  ;;  %s36_s28 = int_to_ptr.vmem [resolvable:$true] %s35_s28  ;;  %s58_s8 = int_to_ptr.hbm [resolvable:$true] %s57_s8 }
   0x5   :  { %s1568_s9 = smov 128   ;;  %s1569_s10 = smov 8  }
   0x6   :  { %41 = dma.hbm_to_vmem [thread:$0]  %s34_s26, 2048, %s36_s28, [#allocation6], %s1568_s9, %s1568_s9, %s1569_s10  }
   0x7   :  { %s1570_s11 = smov [#allocation8]   ;;  %s20_s1 = sshll.u32 %s1743_s0, 4  ;;  %s21_s1 = int_to_ptr.hbm [resolvable:$true] %s20_s1 }
   0x8   :  { %s59_s12 = sshll.u32 %s1570_s11, 4  ;;  %s47_s16 = sshll.u32 %s1745_s2, 4  ;;  %s60_s12 = int_to_ptr.vmem [resolvable:$true] %s59_s12  ;;  %s48_s16 = int_to_ptr.hbm [resolvable:$true] %s47_s16 }
   0x9   :  { %65 = dma.hbm_to_vmem [thread:$0]  %s58_s8, 4096, %s60_s12, [#allocation9], %s1568_s9, %s1568_s9, %s1569_s10  }
   0xa   :  { %s1571_s17 = smov [#allocation2]   ;;  %s1572_s19 = smov [#allocation7]  }
   0xb   :  { %s22_s18 = sshll.u32 %s1571_s17, 4  ;;  %s49_s0 = sshll.u32 %s1572_s19, 4  ;;  %s23_s18 = int_to_ptr.vmem [resolvable:$true] %s22_s18  ;;  %s50_s0 = int_to_ptr.vmem [resolvable:$true] %s49_s0 }
   0xc   :  { %28 = dma.hbm_to_vmem [thread:$0]  %s21_s1, 2048, %s23_s18, [#allocation3], %s1568_s9, %s1568_s9, %s1569_s10  }
   0xd   :  { %s72_s22 = sshll.u32 %s1748_s5, 4  ;;  %s1573_s23 = smov [#allocation10]   ;;  %s73_s22 = int_to_ptr.hbm [resolvable:$true] %s72_s22 }
   0xe   :  { %52 = dma.hbm_to_vmem [thread:$0]  %s48_s16, 32, %s50_s0, [#allocation6]  }
   0xf   :  { %s74_s24 = sshll.u32 %s1573_s23, 4  ;;  %s1574_s2 = smov 64   ;;  %s75_s24 = int_to_ptr.vmem [resolvable:$true] %s74_s24 }
  0x10   :  { %s1575_s25 = smov 4  }
  0x11   :  { %80 = dma.hbm_to_vmem [thread:$0]  %s73_s22, 2048, %s75_s24, [#allocation9], %s1574_s2, %s1574_s2, %s1575_s25  }
  0x12   :  { %1559 = dma.done.wait [#allocation3], 2048  }
  0x13   :  { %1560 = vsyncadd [#allocation3], 4294965248 }
  0x14   :  { %1561 = dma.done.wait [#allocation6], 2080  }
  0x15   :  { %1562 = vsyncadd [#allocation6], 4294965216 }
  0x16   :  { %1563 = dma.done.wait [#allocation9], 6144  }
  0x17   :  { %1564 = vsyncadd [#allocation9], 4294961152  ;;  %v1142_v0 = vld [vmem:[#allocation5 + $0x70] sm:$0xf]  ;;  %v1355_v1 = vld [vmem:[#allocation5 + $0x74] sm:$0xf0] }
  0x18   :  { %v1354_v2 = vld [vmem:[#allocation5 + $0x74] sm:$0xf]  ;;  %v1143_v3 = vor.u32 %v1355_v1, %v1142_v0  ;;  %v1144_v4 = vld [vmem:[#allocation5 + $0x78] sm:$0xf0]  ;;  %v1134_v5 = vld [vmem:[#allocation5 + $0x60] sm:$0xf] }
  0x19   :  { %v1353_v6 = vld [vmem:[#allocation5 + $0x64] sm:$0xf0]  ;;  %v1147_v7 = vor.u32 %v1354_v2, %v1144_v4  ;;  %v1352_v8 = vld [vmem:[#allocation5 + $0x64] sm:$0xf]  ;;  %v1136_v9 = vld [vmem:[#allocation5 + $0x68] sm:$0xf0] }
  0x1a   :  { %229 = vmatpush.bf16.msra.mxu0 %v1143_v3  ;;  %v1135_v10 = vor.u32 %v1353_v6, %v1134_v5  ;;  %v1139_v11 = vor.u32 %v1352_v8, %v1136_v9  ;;  %v1126_v12 = vld [vmem:[#allocation5 + $0x50] sm:$0xf]  ;;  %v1351_v13 = vld [vmem:[#allocation5 + $0x54] sm:$0xf0]  ;;  %v1350_v14 = vld [vmem:[#allocation5 + $0x54] sm:$0xf] }
  0x1b   :  { %278 = vmatpush.bf16.msra.mxu1 %v1147_v7  ;;  %v1128_v15 = vld [vmem:[#allocation5 + $0x58] sm:$0xf0]  ;;  %v1127_v16 = vor.u32 %v1351_v13, %v1126_v12  ;;  %v1118_v18 = vld [vmem:[#allocation5 + $0x40] sm:$0xf]  ;;  %v1349_v19 = vld [vmem:[#allocation5 + $0x44] sm:$0xf0] }
  0x1c   :  { %v1131_v17 = vor.u32 %v1350_v14, %v1128_v15  ;;  %v1348_v20 = vld [vmem:[#allocation5 + $0x44] sm:$0xf]  ;;  %v1120_v21 = vld [vmem:[#allocation5 + $0x48] sm:$0xf0]  ;;  %v1119_v22 = vor.u32 %v1349_v19, %v1118_v18  ;;  %v1110_v24 = vld [vmem:[#allocation5 + $0x30] sm:$0xf] }
  0x1d   :  { %v1123_v23 = vor.u32 %v1348_v20, %v1120_v21  ;;  %v1347_v25 = vld [vmem:[#allocation5 + $0x34] sm:$0xf0]  ;;  %v1346_v26 = vld [vmem:[#allocation5 + $0x34] sm:$0xf]  ;;  %v1112_v27 = vld [vmem:[#allocation5 + $0x38] sm:$0xf0] }
  0x1e   :  { %230 = vmatpush.bf16.msra.mxu0 %v1135_v10  ;;  %v1111_v28 = vor.u32 %v1347_v25, %v1110_v24  ;;  %v1115_v29 = vor.u32 %v1346_v26, %v1112_v27  ;;  %v1102_v30 = vld [vmem:[#allocation5 + $0x20] sm:$0xf]  ;;  %v1345_v31 = vld [vmem:[#allocation5 + $0x24] sm:$0xf0]  ;;  %v1344_v32 = vld [vmem:[#allocation5 + $0x24] sm:$0xf] }
  0x1f   :  { %279 = vmatpush.bf16.msra.mxu1 %v1139_v11  ;;  %v1104_v33 = vld [vmem:[#allocation5 + $0x28] sm:$0xf0]  ;;  %v1103_v34 = vor.u32 %v1345_v31, %v1102_v30  ;;  %v1094_v36 = vld [vmem:[#allocation5 + $0x10] sm:$0xf]  ;;  %v1343_v37 = vld [vmem:[#allocation5 + $0x14] sm:$0xf0] }
  0x20   :  { %v1107_v35 = vor.u32 %v1344_v32, %v1104_v33  ;;  %v1342_v38 = vld [vmem:[#allocation5 + $0x14] sm:$0xf]  ;;  %v1096_v39 = vld [vmem:[#allocation5 + $0x18] sm:$0xf0]  ;;  %v1095_v40 = vor.u32 %v1343_v37, %v1094_v36  ;;  %v1086_v42 = vld [vmem:[#allocation5] sm:$0xf] }
  0x21   :  { %v1099_v41 = vor.u32 %v1342_v38, %v1096_v39  ;;  %v1341_v43 = vld [vmem:[#allocation5 + $0x4] sm:$0xf0]  ;;  %v1340_v44 = vld [vmem:[#allocation5 + $0x4] sm:$0xf]  ;;  %v1088_v45 = vld [vmem:[#allocation5 + $0x8] sm:$0xf0] }
  0x22   :  { %231 = vmatpush.bf16.msra.mxu0 %v1127_v16  ;;  %v1370_v46 = vld [vmem:[#allocation8 + $0x74] sm:$0xf]  ;;  %v1208_v47 = vld [vmem:[#allocation8 + $0x78] sm:$0xf0]  ;;  %v1087_v50 = vor.u32 %v1341_v43, %v1086_v42  ;;  %v104_v52 = vld [vmem:[#allocation2 + $0x8] sm:$0xff]  ;;  %v1091_v53 = vor.u32 %v1340_v44, %v1088_v45  ;;  %s1069_s8 = sshll.u32 %s1750_s7, 4  ;;  %s1070_s8 = int_to_ptr.hbm [resolvable:$true] %s1069_s8 }
  0x23   :  { %280 = vmatpush.bf16.msra.mxu1 %v1131_v17  ;;  %v1386_v48 = vld [vmem:[#allocation8 + $0xf4] sm:$0xf]  ;;  %v1272_v49 = vld [vmem:[#allocation8 + $0xf8] sm:$0xf0]  ;;  %v1211_v54 = vor.u32 %v1370_v46, %v1208_v47  ;;  %v1368_v57 = vld [vmem:[#allocation8 + $0x64] sm:$0xf] }
  0x24   :  { %v103_v51 = vld [vmem:[#allocation2] sm:$0xff]  ;;  %v1275_v55 = vor.u32 %v1386_v48, %v1272_v49  ;;  %v1200_v58 = vld [vmem:[#allocation8 + $0x68] sm:$0xf0]  ;;  %v106_v0 = vld [vmem:[#allocation2 + $0x18] sm:$0xff] }
  0x25   :  { %v119_v56 = vpack.c.bf16 %v104_v52, %v103_v51  ;;  %v1384_v59 = vld [vmem:[#allocation8 + $0xe4] sm:$0xf]  ;;  %v1203_v60 = vor.u32 %v1368_v57, %v1200_v58  ;;  %v1264_v61 = vld [vmem:[#allocation8 + $0xe8] sm:$0xf0]  ;;  %v1366_v2 = vld [vmem:[#allocation8 + $0x54] sm:$0xf] }
  0x26   :  { %232 = vmatpush.bf16.msra.mxu0 %v1119_v22  ;;  %v1267_v62 = vor.u32 %v1384_v59, %v1264_v61  ;;  %v105_v63 = vld [vmem:[#allocation2 + $0x10] sm:$0xff]  ;;  %v1192_v3 = vld [vmem:[#allocation8 + $0x58] sm:$0xf0]  ;;  %v108_v9 = vld [vmem:[#allocation2 + $0x28] sm:$0xff] }
  0x27   :  { %281 = vmatpush.bf16.msra.mxu1 %v1123_v23  ;;  %v120_v1 = vpack.c.bf16 %v106_v0, %v105_v63  ;;  %v1382_v4 = vld [vmem:[#allocation8 + $0xd4] sm:$0xf]  ;;  %v1195_v5 = vor.u32 %v1366_v2, %v1192_v3  ;;  %v1256_v6 = vld [vmem:[#allocation8 + $0xd8] sm:$0xf0]  ;;  %v1364_v11 = vld [vmem:[#allocation8 + $0x44] sm:$0xf] }
  0x28   :  { %v1259_v7 = vor.u32 %v1382_v4, %v1256_v6  ;;  %v107_v8 = vld [vmem:[#allocation2 + $0x20] sm:$0xff]  ;;  %v1184_v12 = vld [vmem:[#allocation8 + $0x48] sm:$0xf0]  ;;  %v110_v18 = vld [vmem:[#allocation2 + $0x38] sm:$0xff] }
  0x29   :  { %v121_v10 = vpack.c.bf16 %v108_v9, %v107_v8  ;;  %v1380_v13 = vld [vmem:[#allocation8 + $0xc4] sm:$0xf]  ;;  %v1187_v14 = vor.u32 %v1364_v11, %v1184_v12  ;;  %v1248_v15 = vld [vmem:[#allocation8 + $0xc8] sm:$0xf0]  ;;  %v1362_v20 = vld [vmem:[#allocation8 + $0x34] sm:$0xf] }
  0x2a   :  { %233 = vmatpush.bf16.msra.mxu0 %v1111_v28  ;;  %v1251_v16 = vor.u32 %v1380_v13, %v1248_v15  ;;  %v109_v17 = vld [vmem:[#allocation2 + $0x30] sm:$0xff]  ;;  %v1176_v21 = vld [vmem:[#allocation8 + $0x38] sm:$0xf0]  ;;  %v112_v27 = vld [vmem:[#allocation2 + $0x48] sm:$0xff] }
  0x2b   :  { %282 = vmatpush.bf16.msra.mxu1 %v1115_v29  ;;  %v122_v19 = vpack.c.bf16 %v110_v18, %v109_v17  ;;  %v1378_v22 = vld [vmem:[#allocation8 + $0xb4] sm:$0xf]  ;;  %v1179_v23 = vor.u32 %v1362_v20, %v1176_v21  ;;  %v1240_v24 = vld [vmem:[#allocation8 + $0xb8] sm:$0xf0]  ;;  %v1360_v29 = vld [vmem:[#allocation8 + $0x24] sm:$0xf] }
  0x2c   :  { %v1243_v25 = vor.u32 %v1378_v22, %v1240_v24  ;;  %v111_v26 = vld [vmem:[#allocation2 + $0x40] sm:$0xff]  ;;  %v1168_v30 = vld [vmem:[#allocation8 + $0x28] sm:$0xf0]  ;;  %v1270_v38 = vld [vmem:[#allocation8 + $0xf0] sm:$0xf] }
  0x2d   :  { %v123_v28 = vpack.c.bf16 %v112_v27, %v111_v26  ;;  %v1376_v31 = vld [vmem:[#allocation8 + $0xa4] sm:$0xf]  ;;  %v1171_v32 = vor.u32 %v1360_v29, %v1168_v30  ;;  %v1232_v33 = vld [vmem:[#allocation8 + $0xa8] sm:$0xf0]  ;;  %v1387_v39 = vld [vmem:[#allocation8 + $0xf4] sm:$0xf0] }
  0x2e   :  { %234 = vmatpush.bf16.msra.mxu0 %v1103_v34  ;;  %v1206_v34 = vld [vmem:[#allocation8 + $0x70] sm:$0xf]  ;;  %v1235_v36 = vor.u32 %v1376_v31, %v1232_v33  ;;  %v114_v42 = vld [vmem:[#allocation2 + $0x58] sm:$0xff]  ;;  %v1198_v44 = vld [vmem:[#allocation8 + $0x60] sm:$0xf] }
  0x2f   :  { %283 = vmatpush.bf16.msra.mxu1 %v1107_v35  ;;  %v1371_v35 = vld [vmem:[#allocation8 + $0x74] sm:$0xf0]  ;;  %v1369_v45 = vld [vmem:[#allocation8 + $0x64] sm:$0xf0]  ;;  %v1262_v46 = vld [vmem:[#allocation8 + $0xe0] sm:$0xf] }
  0x30   :  { %v1207_v37 = vor.u32 %v1371_v35, %v1206_v34  ;;  %v1199_v47 = vor.u32 %v1369_v45, %v1198_v44  ;;  %v1385_v48 = vld [vmem:[#allocation8 + $0xe4] sm:$0xf0]  ;;  %v1160_v51 = vld [vmem:[#allocation8 + $0x18] sm:$0xf0]  ;;  %v1190_v52 = vld [vmem:[#allocation8 + $0x50] sm:$0xf] }
  0x31   :  { %v1263_v49 = vor.u32 %v1385_v48, %v1262_v46  ;;  %v1374_v59 = vld [vmem:[#allocation8 + $0x94] sm:$0xf]  ;;  %v1182_v61 = vld [vmem:[#allocation8 + $0x40] sm:$0xf]  ;;  %v1365_v63 = vld [vmem:[#allocation8 + $0x44] sm:$0xf0] }
  0x32   :  { %235 = vmatpush.bf16.msra.mxu0 %v1095_v40  ;;  %v1271_v40 = vor.u32 %v1387_v39, %v1270_v38  ;;  %573 = vmatpush.bf16.msra.mxu2 %v1207_v37  ;;  %v1246_v0 = vld [vmem:[#allocation8 + $0xc0] sm:$0xf]  ;;  %v1183_v2 = vor.u32 %v1365_v63, %v1182_v61  ;;  %v1174_v6 = vld [vmem:[#allocation8 + $0x30] sm:$0xf]  ;;  %v1379_v11 = vld [vmem:[#allocation8 + $0xb4] sm:$0xf0] }
  0x33   :  { %284 = vmatpush.bf16.msra.mxu1 %v1099_v41  ;;  %v113_v41 = vld [vmem:[#allocation2 + $0x50] sm:$0xff]  ;;  %v115_v4 = vld [vmem:[#allocation2 + $0x60] sm:$0xff]  ;;  %v1377_v17 = vld [vmem:[#allocation8 + $0xa4] sm:$0xf0] }
  0x34   :  { %622 = vmatpush.bf16.msra.mxu3 %v1271_v40  ;;  %v124_v43 = vpack.c.bf16 %v114_v42, %v113_v41  ;;  %v1238_v8 = vld [vmem:[#allocation8 + $0xb0] sm:$0xf]  ;;  %v1166_v13 = vld [vmem:[#allocation8 + $0x20] sm:$0xf]  ;;  %v1152_v20 = vld [vmem:[#allocation8 + $0x8] sm:$0xf0] }
  0x35   :  { %v1239_v12 = vor.u32 %v1379_v11, %v1238_v8  ;;  %v1158_v22 = vld [vmem:[#allocation8 + $0x10] sm:$0xf]  ;;  %v1375_v26 = vld [vmem:[#allocation8 + $0x94] sm:$0xf0]  ;;  %v1216_v29 = vld [vmem:[#allocation8 + $0x88] sm:$0xf0] }
  0x36   :  { %236 = vmatpush.bf16.msra.mxu0 %v1087_v50  ;;  %v1358_v50 = vld [vmem:[#allocation8 + $0x14] sm:$0xf]  ;;  %574 = vmatpush.bf16.msra.mxu2 %v1199_v47  ;;  %v1222_v24 = vld [vmem:[#allocation8 + $0x90] sm:$0xf]  ;;  %v1150_v30 = vld [vmem:[#allocation8] sm:$0xf] }
  0x37   :  { %285 = vmatpush.bf16.msra.mxu1 %v1091_v53  ;;  %v1163_v53 = vor.u32 %v1358_v50, %v1160_v51  ;;  %v1223_v27 = vor.u32 %v1375_v26, %v1222_v24  ;;  %v1214_v33 = vld [vmem:[#allocation8 + $0x80] sm:$0xf]  ;;  %v1373_v34 = vld [vmem:[#allocation8 + $0x84] sm:$0xf0]  ;;  %v117_v35 = vld [vmem:[#allocation2 + $0x70] sm:$0xff] }
  0x38   :  { %623 = vmatpush.bf16.msra.mxu3 %v1263_v49  ;;  %v1215_v38 = vor.u32 %v1373_v34, %v1214_v33  ;;  %v143_v40 = vld [vmem:[#allocation7] sm:$0x3]  ;;  %v1394_v61 = vld [vmem:[#allocation10 + $0x30] sm:$0xff] }
  0x39   :  { %237 = vmatmul.bf16.vlgmr.msra.gmra.mxu0 %v119_v56  ;;  %v1643_v44 = vperm.slane %v143_v40, 1  ;;  %v1395_v45 = vld [vmem:[#allocation10 + $0x38] sm:$0xff] }
  0x3a   :  { %671 = vmatpush.bf16.msrb.mxu0 %v1211_v54  ;;  %286 = vmatmul.bf16.vlgmr.msra.gmra.mxu1 %v119_v56  ;;  %v1367_v54 = vld [vmem:[#allocation8 + $0x54] sm:$0xf0] }
  0x3b   :  { %720 = vmatpush.bf16.msrb.mxu1 %v1275_v55  ;;  %v1254_v55 = vld [vmem:[#allocation8 + $0xd0] sm:$0xf]  ;;  %v1383_v56 = vld [vmem:[#allocation8 + $0xd4] sm:$0xf0]  ;;  %v1191_v57 = vor.u32 %v1367_v54, %v1190_v52 }
  0x3c   :  { %v1255_v58 = vor.u32 %v1383_v56, %v1254_v55  ;;  %v1403_v46 = vld [vmem:[#allocation10 + $0x78] sm:$0xff] }
  0x3d   :  { %575 = vmatpush.bf16.msra.mxu2 %v1191_v57 }
  0x3e   :  { %672 = vmatpush.bf16.msrb.mxu0 %v1203_v60  ;;  %v1224_v60 = vld [vmem:[#allocation8 + $0x98] sm:$0xf0]  ;;  %624 = vmatpush.bf16.msra.mxu3 %v1255_v58 }
  0x3f   :  { %721 = vmatpush.bf16.msrb.mxu1 %v1267_v62  ;;  %v1227_v62 = vor.u32 %v1374_v59, %v1224_v60 }
  0x41   :  { %576 = vmatpush.bf16.msra.mxu2 %v1183_v2 }
  0x42   :  { %673 = vmatpush.bf16.msrb.mxu0 %v1195_v5  ;;  %v116_v5 = vld [vmem:[#allocation2 + $0x68] sm:$0xff] }
  0x43   :  { %722 = vmatpush.bf16.msrb.mxu1 %v1259_v7  ;;  %v1363_v7 = vld [vmem:[#allocation8 + $0x34] sm:$0xf0]  ;;  %v125_v9 = vpack.c.bf16 %v116_v5, %v115_v4 }
  0x46   :  { %674 = vmatpush.bf16.msrb.mxu0 %v1187_v14  ;;  %v1361_v14 = vld [vmem:[#allocation8 + $0x24] sm:$0xf0] }
  0x47   :  { %723 = vmatpush.bf16.msrb.mxu1 %v1251_v16  ;;  %v1167_v15 = vor.u32 %v1361_v14, %v1166_v13  ;;  %v1230_v16 = vld [vmem:[#allocation8 + $0xa0] sm:$0xf]  ;;  %v1393_v13 = vld [vmem:[#allocation10 + $0x28] sm:$0xff] }
  0x48   :  { %v1231_v18 = vor.u32 %v1377_v17, %v1230_v16  ;;  %v1401_v14 = vld [vmem:[#allocation10 + $0x68] sm:$0xff] }
  0x49   :  { %242 = vmatmul.bf16.gmra.mxu0 %v120_v1 }
  0x4a   :  { %291 = vmatmul.bf16.gmra.mxu1 %v120_v1  ;;  %675 = vmatpush.bf16.msrb.mxu0 %v1179_v23  ;;  %v1381_v1 = vld [vmem:[#allocation8 + $0xc4] sm:$0xf0]  ;;  %v1359_v23 = vld [vmem:[#allocation8 + $0x14] sm:$0xf0] }
  0x4b   :  { %724 = vmatpush.bf16.msrb.mxu1 %v1243_v25  ;;  %v1247_v3 = vor.u32 %v1381_v1, %v1246_v0  ;;  %v1159_v25 = vor.u32 %v1359_v23, %v1158_v22 }
  0x4d   :  { %625 = vmatpush.bf16.msra.mxu3 %v1247_v3 }
  0x4e   :  { %676 = vmatpush.bf16.msrb.mxu0 %v1171_v32  ;;  %v1357_v32 = vld [vmem:[#allocation8 + $0x4] sm:$0xf0] }
  0x4f   :  { %725 = vmatpush.bf16.msrb.mxu1 %v1235_v36  ;;  %v118_v36 = vld [vmem:[#allocation2 + $0x78] sm:$0xff]  ;;  %v1151_v37 = vor.u32 %v1357_v32, %v1150_v30  ;;  %v1400_v30 = vld [vmem:[#allocation10 + $0x60] sm:$0xff] }
  0x50   :  { %v126_v39 = vpack.c.bf16 %v118_v36, %v117_v35 }
  0x51   :  { %626 = vmatpush.bf16.msra.mxu3 %v1239_v12 }
  0x52   :  { %677 = vmatpush.bf16.msrb.mxu0 %v1163_v53 }
  0x53   :  { %726 = vmatpush.bf16.msrb.mxu1 %v1227_v62  ;;  %v1402_v62 = vld [vmem:[#allocation10 + $0x70] sm:$0xff] }
  0x55   :  { %627 = vmatpush.bf16.msra.mxu3 %v1231_v18 }
  0x59   :  { %247 = vmatmul.bf16.gmra.mxu0 %v121_v10  ;;  %628 = vmatpush.bf16.msra.mxu3 %v1223_v27 }
  0x5a   :  { %296 = vmatmul.bf16.gmra.mxu1 %v121_v10  ;;  %v1175_v10 = vor.u32 %v1363_v7, %v1174_v6 }
  0x5c   :  { %577 = vmatpush.bf16.msra.mxu2 %v1175_v10 }
  0x5d   :  { %629 = vmatpush.bf16.msra.mxu3 %v1215_v38 }
  0x60   :  { %578 = vmatpush.bf16.msra.mxu2 %v1167_v15 }
  0x61   :  { %998 = vmatpush.bf16.msrb.mxu3 %v1403_v46 }
  0x64   :  { %579 = vmatpush.bf16.msra.mxu2 %v1159_v25 }
  0x65   :  { %999 = vmatpush.bf16.msrb.mxu3 %v1402_v62 }
  0x68   :  { %580 = vmatpush.bf16.msra.mxu2 %v1151_v37 }
  0x69   :  { %252 = vmatmul.bf16.gmra.mxu0 %v122_v19  ;;  %1000 = vmatpush.bf16.msrb.mxu3 %v1401_v14  ;;  %v1389_v14 = vld [vmem:[#allocation10 + $0x8] sm:$0xff] }
  0x6a   :  { %301 = vmatmul.bf16.gmra.mxu1 %v122_v19  ;;  %v1356_v19 = vld [vmem:[#allocation8 + $0x4] sm:$0xf] }
  0x6b   :  { %v1155_v21 = vor.u32 %v1356_v19, %v1152_v20 }
  0x6c   :  { %949 = vmatpush.bf16.msrb.mxu2 %v1395_v45 }
  0x6d   :  { %678 = vmatpush.bf16.msrb.mxu0 %v1155_v21  ;;  %1001 = vmatpush.bf16.msrb.mxu3 %v1400_v30 }
  0x70   :  { %950 = vmatpush.bf16.msrb.mxu2 %v1394_v61 }
  0x74   :  { %951 = vmatpush.bf16.msrb.mxu2 %v1393_v13 }
  0x79   :  { %257 = vmatmul.bf16.gmra.mxu0 %v123_v28 }
  0x7a   :  { %306 = vmatmul.bf16.gmra.mxu1 %v123_v28  ;;  %v1372_v28 = vld [vmem:[#allocation8 + $0x84] sm:$0xf] }
  0x7b   :  { %v1219_v31 = vor.u32 %v1372_v28, %v1216_v29  ;;  %v1392_v29 = vld [vmem:[#allocation10 + $0x20] sm:$0xff] }
  0x7c   :  { %952 = vmatpush.bf16.msrb.mxu2 %v1392_v29 }
  0x7d   :  { %727 = vmatpush.bf16.msrb.mxu1 %v1219_v31 }
  0x89   :  { %262 = vmatmul.bf16.gmra.mxu0 %v124_v43 }
  0x8a   :  { %311 = vmatmul.bf16.gmra.mxu1 %v124_v43  ;;  %v1641_v43 = vperm.slane %v143_v40, 0 }
  0x99   :  { %267 = vmatmul.bf16.gmra.mxu0 %v125_v9 }
  0x9a   :  { %316 = vmatmul.bf16.gmra.mxu1 %v125_v9 }
  0xa9   :  { %272 = vmatmul.bf16.gmra.mxu0 %v126_v39 }
  0xaa   :  { %321 = vmatmul.bf16.gmra.mxu1 %v126_v39 }
  0xb6   :  { %v238_v41 = vpop.f32.mrf.mxu0 }
  0xb7   :  { %v287_v42 = vpop.f32.mrf.mxu1  ;;  %v239_v47 = vadd.f32 %v238_v41, %v1641_v43 }
  0xb8   :  { %v288_v48 = vadd.f32 %v287_v42, %v1643_v44 }
  0xb9   :  { %v327_v53 = vmax.f32 %v239_v47, 0.0  ;;  %v1391_v47 = vld [vmem:[#allocation10 + $0x18] sm:$0xff] }
  0xba   :  { %v328_v55 = vmax.f32 %v288_v48, 0.0  ;;  %v1399_v48 = vld [vmem:[#allocation10 + $0x58] sm:$0xff]  ;;  %953 = vmatpush.bf16.msrb.mxu2 %v1391_v47 }
  0xbb   :  { %1002 = vmatpush.bf16.msrb.mxu3 %v1399_v48 }
  0xbe   :  { %v240_v49 = vpop.f32.mrf.mxu0 }
  0xbf   :  { %v241_v50 = vadd.f32 %v240_v49, %v1641_v43  ;;  %v289_v51 = vpop.f32.mrf.mxu1 }
  0xc0   :  { %v290_v52 = vadd.f32 %v289_v51, %v1643_v44 }
  0xc1   :  { %v329_v54 = vmax.f32 %v241_v50, 0.0 }
  0xc2   :  { %v330_v56 = vmax.f32 %v290_v52, 0.0 }
  0xc3   :  { %v359_v57 = vpack.c.bf16 %v329_v54, %v327_v53 }
  0xc4   :  { %v360_v58 = vpack.c.bf16 %v330_v56, %v328_v55 }
  0xc5   :  { %581 = vmatmul.bf16.vlgmr.msra.gmra.mxu2 %v359_v57  ;;  %679 = vmatmul.bf16.vlgmr.msrb.gmra.mxu0 %v359_v57 }
  0xc6   :  { %630 = vmatmul.bf16.vlgmr.msra.gmra.mxu3 %v360_v58  ;;  %728 = vmatmul.bf16.vlgmr.msrb.gmra.mxu1 %v360_v58  ;;  %v243_v59 = vpop.f32.mrf.mxu0 }
  0xc7   :  { %v292_v60 = vpop.f32.mrf.mxu1  ;;  %v244_v63 = vadd.f32 %v243_v59, %v1641_v43 }
  0xc8   :  { %v293_v0 = vadd.f32 %v292_v60, %v1643_v44 }
  0xc9   :  { %v331_v5 = vmax.f32 %v244_v63, 0.0  ;;  %v1390_v63 = vld [vmem:[#allocation10 + $0x10] sm:$0xff] }
  0xca   :  { %v332_v7 = vmax.f32 %v293_v0, 0.0  ;;  %v1398_v0 = vld [vmem:[#allocation10 + $0x50] sm:$0xff]  ;;  %954 = vmatpush.bf16.msrb.mxu2 %v1390_v63 }
  0xcb   :  { %1003 = vmatpush.bf16.msrb.mxu3 %v1398_v0 }
  0xce   :  { %v245_v1 = vpop.f32.mrf.mxu0  ;;  %955 = vmatpush.bf16.msrb.mxu2 %v1389_v14 }
  0xcf   :  { %v246_v2 = vadd.f32 %v245_v1, %v1641_v43  ;;  %v294_v3 = vpop.f32.mrf.mxu1 }
  0xd0   :  { %v295_v4 = vadd.f32 %v294_v3, %v1643_v44 }
  0xd1   :  { %v333_v6 = vmax.f32 %v246_v2, 0.0 }
  0xd2   :  { %v334_v8 = vmax.f32 %v295_v4, 0.0 }
  0xd3   :  { %v361_v9 = vpack.c.bf16 %v333_v6, %v331_v5 }
  0xd4   :  { %v362_v10 = vpack.c.bf16 %v334_v8, %v332_v7 }
  0xd5   :  { %586 = vmatmul.bf16.gmra.mxu2 %v361_v9  ;;  %684 = vmatmul.bf16.gmra.mxu0 %v361_v9 }
  0xd6   :  { %635 = vmatmul.bf16.gmra.mxu3 %v362_v10  ;;  %733 = vmatmul.bf16.gmra.mxu1 %v362_v10  ;;  %v248_v11 = vpop.f32.mrf.mxu0 }
  0xd7   :  { %v297_v12 = vpop.f32.mrf.mxu1  ;;  %v249_v15 = vadd.f32 %v248_v11, %v1641_v43 }
  0xd8   :  { %v298_v16 = vadd.f32 %v297_v12, %v1643_v44 }
  0xd9   :  { %v335_v21 = vmax.f32 %v249_v15, 0.0  ;;  %v1397_v15 = vld [vmem:[#allocation10 + $0x48] sm:$0xff] }
  0xda   :  { %v336_v23 = vmax.f32 %v298_v16, 0.0  ;;  %1004 = vmatpush.bf16.msrb.mxu3 %v1397_v15 }
  0xde   :  { %v250_v17 = vpop.f32.mrf.mxu0 }
  0xdf   :  { %v251_v18 = vadd.f32 %v250_v17, %v1641_v43  ;;  %v299_v19 = vpop.f32.mrf.mxu1 }
  0xe0   :  { %v300_v20 = vadd.f32 %v299_v19, %v1643_v44 }
  0xe1   :  { %v337_v22 = vmax.f32 %v251_v18, 0.0 }
  0xe2   :  { %v338_v24 = vmax.f32 %v300_v20, 0.0 }
  0xe3   :  { %v363_v25 = vpack.c.bf16 %v337_v22, %v335_v21 }
  0xe4   :  { %v364_v26 = vpack.c.bf16 %v338_v24, %v336_v23 }
  0xe5   :  { %591 = vmatmul.bf16.gmra.mxu2 %v363_v25  ;;  %689 = vmatmul.bf16.gmra.mxu0 %v363_v25 }
  0xe6   :  { %640 = vmatmul.bf16.gmra.mxu3 %v364_v26  ;;  %738 = vmatmul.bf16.gmra.mxu1 %v364_v26  ;;  %v253_v27 = vpop.f32.mrf.mxu0 }
  0xe7   :  { %v302_v28 = vpop.f32.mrf.mxu1  ;;  %v254_v31 = vadd.f32 %v253_v27, %v1641_v43 }
  0xe8   :  { %v303_v32 = vadd.f32 %v302_v28, %v1643_v44 }
  0xe9   :  { %v339_v37 = vmax.f32 %v254_v31, 0.0 }
  0xea   :  { %v340_v39 = vmax.f32 %v303_v32, 0.0  ;;  %v1388_v32 = vld [vmem:[#allocation10] sm:$0xff] }
  0xeb   :  { %956 = vmatpush.bf16.msrb.mxu2 %v1388_v32 }
  0xee   :  { %v255_v33 = vpop.f32.mrf.mxu0 }
  0xef   :  { %v256_v34 = vadd.f32 %v255_v33, %v1641_v43  ;;  %v304_v35 = vpop.f32.mrf.mxu1 }
  0xf0   :  { %v305_v36 = vadd.f32 %v304_v35, %v1643_v44 }
  0xf1   :  { %v341_v38 = vmax.f32 %v256_v34, 0.0 }
  0xf2   :  { %v342_v40 = vmax.f32 %v305_v36, 0.0 }
  0xf3   :  { %v365_v41 = vpack.c.bf16 %v341_v38, %v339_v37  ;;  %v1396_v37 = vld [vmem:[#allocation10 + $0x40] sm:$0xff] }
  0xf4   :  { %v366_v42 = vpack.c.bf16 %v342_v40, %v340_v39  ;;  %1005 = vmatpush.bf16.msrb.mxu3 %v1396_v37 }
  0xf5   :  { %596 = vmatmul.bf16.gmra.mxu2 %v365_v41  ;;  %694 = vmatmul.bf16.gmra.mxu0 %v365_v41 }
  0xf6   :  { %645 = vmatmul.bf16.gmra.mxu3 %v366_v42  ;;  %743 = vmatmul.bf16.gmra.mxu1 %v366_v42  ;;  %v258_v45 = vpop.f32.mrf.mxu0 }
  0xf7   :  { %v307_v46 = vpop.f32.mrf.mxu1  ;;  %v259_v49 = vadd.f32 %v258_v45, %v1641_v43 }
  0xf8   :  { %v308_v50 = vadd.f32 %v307_v46, %v1643_v44 }
  0xf9   :  { %v343_v55 = vmax.f32 %v259_v49, 0.0 }
  0xfa   :  { %v344_v57 = vmax.f32 %v308_v50, 0.0 }
  0xfe   :  { %v260_v51 = vpop.f32.mrf.mxu0 }
  0xff   :  { %v261_v52 = vadd.f32 %v260_v51, %v1641_v43  ;;  %v309_v53 = vpop.f32.mrf.mxu1 }
 0x100   :  { %v310_v54 = vadd.f32 %v309_v53, %v1643_v44 }
 0x101   :  { %v345_v56 = vmax.f32 %v261_v52, 0.0 }
 0x102   :  { %v346_v58 = vmax.f32 %v310_v54, 0.0 }
 0x103   :  { %v367_v59 = vpack.c.bf16 %v345_v56, %v343_v55 }
 0x104   :  { %v368_v60 = vpack.c.bf16 %v346_v58, %v344_v57 }
 0x105   :  { %601 = vmatmul.bf16.gmra.mxu2 %v367_v59  ;;  %699 = vmatmul.bf16.gmra.mxu0 %v367_v59 }
 0x106   :  { %650 = vmatmul.bf16.gmra.mxu3 %v368_v60  ;;  %748 = vmatmul.bf16.gmra.mxu1 %v368_v60  ;;  %v263_v61 = vpop.f32.mrf.mxu0 }
 0x107   :  { %v312_v62 = vpop.f32.mrf.mxu1  ;;  %v264_v1 = vadd.f32 %v263_v61, %v1641_v43 }
 0x108   :  { %v313_v2 = vadd.f32 %v312_v62, %v1643_v44 }
 0x109   :  { %v347_v7 = vmax.f32 %v264_v1, 0.0 }
 0x10a   :  { %v348_v9 = vmax.f32 %v313_v2, 0.0 }
 0x10e   :  { %v265_v3 = vpop.f32.mrf.mxu0 }
 0x10f   :  { %v266_v4 = vadd.f32 %v265_v3, %v1641_v43  ;;  %v314_v5 = vpop.f32.mrf.mxu1 }
 0x110   :  { %v315_v6 = vadd.f32 %v314_v5, %v1643_v44 }
 0x111   :  { %v349_v8 = vmax.f32 %v266_v4, 0.0 }
 0x112   :  { %v350_v10 = vmax.f32 %v315_v6, 0.0 }
 0x113   :  { %v369_v11 = vpack.c.bf16 %v349_v8, %v347_v7 }
 0x114   :  { %v370_v12 = vpack.c.bf16 %v350_v10, %v348_v9 }
 0x115   :  { %606 = vmatmul.bf16.gmra.mxu2 %v369_v11  ;;  %704 = vmatmul.bf16.gmra.mxu0 %v369_v11 }
 0x116   :  { %655 = vmatmul.bf16.gmra.mxu3 %v370_v12  ;;  %753 = vmatmul.bf16.gmra.mxu1 %v370_v12  ;;  %v268_v13 = vpop.f32.mrf.mxu0 }
 0x117   :  { %v317_v16 = vpop.f32.mrf.mxu1  ;;  %v269_v17 = vadd.f32 %v268_v13, %v1641_v43 }
 0x118   :  { %v318_v18 = vadd.f32 %v317_v16, %v1643_v44 }
 0x119   :  { %v351_v23 = vmax.f32 %v269_v17, 0.0 }
 0x11a   :  { %v352_v25 = vmax.f32 %v318_v18, 0.0 }
 0x11e   :  { %v270_v19 = vpop.f32.mrf.mxu0 }
 0x11f   :  { %v271_v20 = vadd.f32 %v270_v19, %v1641_v43  ;;  %v319_v21 = vpop.f32.mrf.mxu1 }
 0x120   :  { %v320_v22 = vadd.f32 %v319_v21, %v1643_v44 }
 0x121   :  { %v353_v24 = vmax.f32 %v271_v20, 0.0 }
 0x122   :  { %v354_v26 = vmax.f32 %v320_v22, 0.0 }
 0x123   :  { %v371_v27 = vpack.c.bf16 %v353_v24, %v351_v23 }
 0x124   :  { %v372_v28 = vpack.c.bf16 %v354_v26, %v352_v25 }
 0x125   :  { %611 = vmatmul.bf16.gmra.mxu2 %v371_v27  ;;  %709 = vmatmul.bf16.gmra.mxu0 %v371_v27 }
 0x126   :  { %660 = vmatmul.bf16.gmra.mxu3 %v372_v28  ;;  %758 = vmatmul.bf16.gmra.mxu1 %v372_v28  ;;  %v273_v29 = vpop.f32.mrf.mxu0 }
 0x127   :  { %v322_v30 = vpop.f32.mrf.mxu1  ;;  %v274_v31 = vadd.f32 %v273_v29, %v1641_v43 }
 0x128   :  { %v323_v33 = vadd.f32 %v322_v30, %v1643_v44 }
 0x129   :  { %v355_v39 = vmax.f32 %v274_v31, 0.0 }
 0x12a   :  { %v356_v41 = vmax.f32 %v323_v33, 0.0 }
 0x12e   :  { %v275_v34 = vpop.f32.mrf.mxu0 }
 0x12f   :  { %v276_v35 = vadd.f32 %v275_v34, %v1641_v43  ;;  %v324_v36 = vpop.f32.mrf.mxu1  ;;  %v407_v43 = vld [vmem:[%s1747_s4] sm:$0x3] }
 0x130   :  { %v325_v38 = vadd.f32 %v324_v36, %v1643_v44  ;;  %v1680_v48 = vperm.slane %v407_v43, 1  ;;  %v1683_v51 = vperm.slane %v407_v43, 0 }
 0x131   :  { %v357_v40 = vmax.f32 %v276_v35, 0.0 }
 0x132   :  { %v358_v42 = vmax.f32 %v325_v38, 0.0 }
 0x133   :  { %v373_v45 = vpack.c.bf16 %v357_v40, %v355_v39 }
 0x134   :  { %v374_v46 = vpack.c.bf16 %v358_v42, %v356_v41 }
 0x135   :  { %616 = vmatmul.bf16.gmra.mxu2 %v373_v45  ;;  %714 = vmatmul.bf16.gmra.mxu0 %v373_v45 }
 0x136   :  { %665 = vmatmul.bf16.gmra.mxu3 %v374_v46  ;;  %763 = vmatmul.bf16.gmra.mxu1 %v374_v46 }
 0x142   :  { %v680_v47 = vpop.f32.mrf.mxu0 }
 0x143   :  { %v729_v49 = vpop.f32.mrf.mxu1  ;;  %v681_v44 = vadd.f32 %v680_v47, %v1680_v48 }
 0x145   :  { %v730_v54 = vadd.f32 %v729_v49, %v681_v44 }
 0x147   :  { %v770_v59 = vmax.f32 %v730_v54, 0.0 }
 0x148   :  { %v582_v50 = vpop.f32.mrf.mxu2 }
 0x149   :  { %v631_v52 = vpop.f32.mrf.mxu3  ;;  %v583_v57 = vadd.f32 %v582_v50, %v1683_v51 }
 0x14a   :  { %v682_v53 = vpop.f32.mrf.mxu0 }
 0x14b   :  { %v683_v55 = vadd.f32 %v682_v53, %v1680_v48  ;;  %v731_v56 = vpop.f32.mrf.mxu1  ;;  %v632_v62 = vadd.f32 %v631_v52, %v583_v57 }
 0x14d   :  { %v732_v58 = vadd.f32 %v731_v56, %v683_v55  ;;  %v769_v5 = vmax.f32 %v632_v62, 0.0 }
 0x14f   :  { %v772_v60 = vmax.f32 %v732_v58, 0.0 }
 0x150   :  { %v584_v61 = vpop.f32.mrf.mxu2 }
 0x151   :  { %v802_v63 = vpack.c.bf16 %v772_v60, %v770_v59  ;;  %v585_v0 = vadd.f32 %v584_v61, %v1683_v51  ;;  %v633_v1 = vpop.f32.mrf.mxu3 }
 0x152   :  { %v685_v2 = vpop.f32.mrf.mxu0 }
 0x153   :  { %v634_v3 = vadd.f32 %v633_v1, %v585_v0  ;;  %v734_v4 = vpop.f32.mrf.mxu1  ;;  %1006 = vmatmul.bf16.vlgmr.msrb.gmra.mxu3 %v802_v63  ;;  %v686_v7 = vadd.f32 %v685_v2, %v1680_v48 }
 0x155   :  { %v771_v6 = vmax.f32 %v634_v3, 0.0  ;;  %v735_v12 = vadd.f32 %v734_v4, %v686_v7 }
 0x157   :  { %v801_v8 = vpack.c.bf16 %v771_v6, %v769_v5  ;;  %v774_v17 = vmax.f32 %v735_v12, 0.0 }
 0x158   :  { %v587_v9 = vpop.f32.mrf.mxu2 }
 0x159   :  { %v636_v10 = vpop.f32.mrf.mxu3  ;;  %957 = vmatmul.bf16.vlgmr.msrb.gmra.mxu2 %v801_v8  ;;  %v588_v15 = vadd.f32 %v587_v9, %v1683_v51 }
 0x15a   :  { %v687_v11 = vpop.f32.mrf.mxu0 }
 0x15b   :  { %v688_v13 = vadd.f32 %v687_v11, %v1680_v48  ;;  %v736_v14 = vpop.f32.mrf.mxu1  ;;  %v637_v20 = vadd.f32 %v636_v10, %v588_v15 }
 0x15d   :  { %v737_v16 = vadd.f32 %v736_v14, %v688_v13  ;;  %v773_v27 = vmax.f32 %v637_v20, 0.0 }
 0x15f   :  { %v776_v18 = vmax.f32 %v737_v16, 0.0 }
 0x160   :  { %v589_v19 = vpop.f32.mrf.mxu2 }
 0x161   :  { %v590_v21 = vadd.f32 %v589_v19, %v1683_v51  ;;  %v638_v22 = vpop.f32.mrf.mxu3  ;;  %v804_v23 = vpack.c.bf16 %v776_v18, %v774_v17 }
 0x162   :  { %v690_v24 = vpop.f32.mrf.mxu0 }
 0x163   :  { %v639_v25 = vadd.f32 %v638_v22, %v590_v21  ;;  %v739_v26 = vpop.f32.mrf.mxu1  ;;  %1011 = vmatmul.bf16.gmra.mxu3 %v804_v23  ;;  %v691_v29 = vadd.f32 %v690_v24, %v1680_v48 }
 0x165   :  { %v775_v28 = vmax.f32 %v639_v25, 0.0  ;;  %v740_v34 = vadd.f32 %v739_v26, %v691_v29 }
 0x167   :  { %v803_v30 = vpack.c.bf16 %v775_v28, %v773_v27  ;;  %v778_v39 = vmax.f32 %v740_v34, 0.0 }
 0x168   :  { %v592_v31 = vpop.f32.mrf.mxu2 }
 0x169   :  { %v641_v32 = vpop.f32.mrf.mxu3  ;;  %962 = vmatmul.bf16.gmra.mxu2 %v803_v30  ;;  %v593_v37 = vadd.f32 %v592_v31, %v1683_v51 }
 0x16a   :  { %v692_v33 = vpop.f32.mrf.mxu0 }
 0x16b   :  { %v693_v35 = vadd.f32 %v692_v33, %v1680_v48  ;;  %v741_v36 = vpop.f32.mrf.mxu1  ;;  %v642_v42 = vadd.f32 %v641_v32, %v593_v37 }
 0x16d   :  { %v742_v38 = vadd.f32 %v741_v36, %v693_v35  ;;  %v777_v50 = vmax.f32 %v642_v42, 0.0 }
 0x16f   :  { %v780_v40 = vmax.f32 %v742_v38, 0.0 }
 0x170   :  { %v594_v41 = vpop.f32.mrf.mxu2 }
 0x171   :  { %v595_v45 = vadd.f32 %v594_v41, %v1683_v51  ;;  %v643_v46 = vpop.f32.mrf.mxu3  ;;  %v806_v43 = vpack.c.bf16 %v780_v40, %v778_v39 }
 0x172   :  { %v695_v47 = vpop.f32.mrf.mxu0 }
 0x173   :  { %v644_v49 = vadd.f32 %v643_v46, %v595_v45  ;;  %v744_v44 = vpop.f32.mrf.mxu1  ;;  %1016 = vmatmul.bf16.gmra.mxu3 %v806_v43  ;;  %v696_v53 = vadd.f32 %v695_v47, %v1680_v48 }
 0x175   :  { %v779_v52 = vmax.f32 %v644_v49, 0.0  ;;  %v745_v58 = vadd.f32 %v744_v44, %v696_v53 }
 0x177   :  { %v805_v54 = vpack.c.bf16 %v779_v52, %v777_v50  ;;  %v782_v63 = vmax.f32 %v745_v58, 0.0 }
 0x178   :  { %v597_v55 = vpop.f32.mrf.mxu2 }
 0x179   :  { %v646_v56 = vpop.f32.mrf.mxu3  ;;  %967 = vmatmul.bf16.gmra.mxu2 %v805_v54  ;;  %v598_v61 = vadd.f32 %v597_v55, %v1683_v51 }
 0x17a   :  { %v697_v57 = vpop.f32.mrf.mxu0 }
 0x17b   :  { %v698_v59 = vadd.f32 %v697_v57, %v1680_v48  ;;  %v746_v60 = vpop.f32.mrf.mxu1  ;;  %v647_v2 = vadd.f32 %v646_v56, %v598_v61 }
 0x17d   :  { %v747_v62 = vadd.f32 %v746_v60, %v698_v59  ;;  %v781_v9 = vmax.f32 %v647_v2, 0.0 }
 0x17f   :  { %v784_v0 = vmax.f32 %v747_v62, 0.0 }
 0x180   :  { %v599_v1 = vpop.f32.mrf.mxu2 }
 0x181   :  { %v600_v3 = vadd.f32 %v599_v1, %v1683_v51  ;;  %v648_v4 = vpop.f32.mrf.mxu3  ;;  %v808_v5 = vpack.c.bf16 %v784_v0, %v782_v63 }
 0x182   :  { %v700_v6 = vpop.f32.mrf.mxu0 }
 0x183   :  { %v649_v7 = vadd.f32 %v648_v4, %v600_v3  ;;  %v749_v8 = vpop.f32.mrf.mxu1  ;;  %1021 = vmatmul.bf16.gmra.mxu3 %v808_v5  ;;  %v701_v11 = vadd.f32 %v700_v6, %v1680_v48 }
 0x185   :  { %v783_v10 = vmax.f32 %v649_v7, 0.0  ;;  %v750_v16 = vadd.f32 %v749_v8, %v701_v11 }
 0x187   :  { %v807_v12 = vpack.c.bf16 %v783_v10, %v781_v9  ;;  %v786_v21 = vmax.f32 %v750_v16, 0.0 }
 0x188   :  { %v602_v13 = vpop.f32.mrf.mxu2 }
 0x189   :  { %v651_v14 = vpop.f32.mrf.mxu3  ;;  %972 = vmatmul.bf16.gmra.mxu2 %v807_v12  ;;  %v603_v19 = vadd.f32 %v602_v13, %v1683_v51 }
 0x18a   :  { %v702_v15 = vpop.f32.mrf.mxu0 }
 0x18b   :  { %v703_v17 = vadd.f32 %v702_v15, %v1680_v48  ;;  %v751_v18 = vpop.f32.mrf.mxu1  ;;  %v652_v24 = vadd.f32 %v651_v14, %v603_v19 }
 0x18d   :  { %v752_v20 = vadd.f32 %v751_v18, %v703_v17  ;;  %v785_v31 = vmax.f32 %v652_v24, 0.0 }
 0x18f   :  { %v788_v22 = vmax.f32 %v752_v20, 0.0 }
 0x190   :  { %v604_v23 = vpop.f32.mrf.mxu2 }
 0x191   :  { %v810_v25 = vpack.c.bf16 %v788_v22, %v786_v21  ;;  %v605_v26 = vadd.f32 %v604_v23, %v1683_v51  ;;  %v653_v27 = vpop.f32.mrf.mxu3 }
 0x192   :  { %v705_v28 = vpop.f32.mrf.mxu0 }
 0x193   :  { %v654_v29 = vadd.f32 %v653_v27, %v605_v26  ;;  %v754_v30 = vpop.f32.mrf.mxu1  ;;  %1026 = vmatmul.bf16.gmra.mxu3 %v810_v25  ;;  %v706_v34 = vadd.f32 %v705_v28, %v1680_v48 }
 0x195   :  { %v787_v32 = vmax.f32 %v654_v29, 0.0  ;;  %v755_v38 = vadd.f32 %v754_v30, %v706_v34 }
 0x197   :  { %v809_v33 = vpack.c.bf16 %v787_v32, %v785_v31  ;;  %v790_v45 = vmax.f32 %v755_v38, 0.0 }
 0x198   :  { %v607_v35 = vpop.f32.mrf.mxu2 }
 0x199   :  { %v656_v36 = vpop.f32.mrf.mxu3  ;;  %977 = vmatmul.bf16.gmra.mxu2 %v809_v33  ;;  %v608_v41 = vadd.f32 %v607_v35, %v1683_v51 }
 0x19a   :  { %v707_v37 = vpop.f32.mrf.mxu0 }
 0x19b   :  { %v708_v39 = vadd.f32 %v707_v37, %v1680_v48  ;;  %v756_v40 = vpop.f32.mrf.mxu1  ;;  %v657_v47 = vadd.f32 %v656_v36, %v608_v41 }
 0x19d   :  { %v757_v42 = vadd.f32 %v756_v40, %v708_v39  ;;  %v789_v55 = vmax.f32 %v657_v47, 0.0 }
 0x19f   :  { %v792_v46 = vmax.f32 %v757_v42, 0.0 }
 0x1a0   :  { %v609_v43 = vpop.f32.mrf.mxu2 }
 0x1a1   :  { %v812_v49 = vpack.c.bf16 %v792_v46, %v790_v45  ;;  %v610_v44 = vadd.f32 %v609_v43, %v1683_v51  ;;  %v658_v50 = vpop.f32.mrf.mxu3 }
 0x1a2   :  { %v710_v52 = vpop.f32.mrf.mxu0 }
 0x1a3   :  { %v659_v53 = vadd.f32 %v658_v50, %v610_v44  ;;  %v759_v54 = vpop.f32.mrf.mxu1  ;;  %1031 = vmatmul.bf16.gmra.mxu3 %v812_v49  ;;  %v711_v58 = vadd.f32 %v710_v52, %v1680_v48 }
 0x1a5   :  { %v791_v56 = vmax.f32 %v659_v53, 0.0  ;;  %v760_v62 = vadd.f32 %v759_v54, %v711_v58 }
 0x1a7   :  { %v811_v57 = vpack.c.bf16 %v791_v56, %v789_v55  ;;  %v794_v3 = vmax.f32 %v760_v62, 0.0 }
 0x1a8   :  { %v612_v59 = vpop.f32.mrf.mxu2 }
 0x1a9   :  { %v661_v60 = vpop.f32.mrf.mxu3  ;;  %982 = vmatmul.bf16.gmra.mxu2 %v811_v57  ;;  %v613_v1 = vadd.f32 %v612_v59, %v1683_v51 }
 0x1aa   :  { %v712_v61 = vpop.f32.mrf.mxu0 }
 0x1ab   :  { %v713_v63 = vadd.f32 %v712_v61, %v1680_v48  ;;  %v761_v0 = vpop.f32.mrf.mxu1  ;;  %v662_v6 = vadd.f32 %v661_v60, %v613_v1 }
 0x1ad   :  { %v762_v2 = vadd.f32 %v761_v0, %v713_v63  ;;  %v793_v13 = vmax.f32 %v662_v6, 0.0 }
 0x1af   :  { %v796_v4 = vmax.f32 %v762_v2, 0.0 }
 0x1b0   :  { %v614_v5 = vpop.f32.mrf.mxu2 }
 0x1b1   :  { %v814_v7 = vpack.c.bf16 %v796_v4, %v794_v3  ;;  %v615_v8 = vadd.f32 %v614_v5, %v1683_v51  ;;  %v663_v9 = vpop.f32.mrf.mxu3 }
 0x1b2   :  { %v715_v10 = vpop.f32.mrf.mxu0 }
 0x1b3   :  { %v664_v11 = vadd.f32 %v663_v9, %v615_v8  ;;  %v764_v12 = vpop.f32.mrf.mxu1  ;;  %1036 = vmatmul.bf16.gmra.mxu3 %v814_v7  ;;  %v716_v16 = vadd.f32 %v715_v10, %v1680_v48 }
 0x1b5   :  { %v795_v14 = vmax.f32 %v664_v11, 0.0  ;;  %v765_v20 = vadd.f32 %v764_v12, %v716_v16 }
 0x1b7   :  { %v813_v15 = vpack.c.bf16 %v795_v14, %v793_v13  ;;  %v798_v25 = vmax.f32 %v765_v20, 0.0 }
 0x1b8   :  { %v617_v17 = vpop.f32.mrf.mxu2 }
 0x1b9   :  { %v666_v18 = vpop.f32.mrf.mxu3  ;;  %987 = vmatmul.bf16.gmra.mxu2 %v813_v15  ;;  %v618_v23 = vadd.f32 %v617_v17, %v1683_v51 }
 0x1ba   :  { %v717_v19 = vpop.f32.mrf.mxu0 }
 0x1bb   :  { %v718_v21 = vadd.f32 %v717_v19, %v1680_v48  ;;  %v766_v22 = vpop.f32.mrf.mxu1  ;;  %v667_v28 = vadd.f32 %v666_v18, %v618_v23  ;;  %v1719_v48 = vld [vmem:[%s1749_s6] ss:$0 sm:$0xff]  ;;  %s1576_s6 = smov [#allocation11]  }
 0x1bc   :  { %s1067_s28 = sshll.u32 %s1576_s6, 4  ;;  %s1068_s28 = int_to_ptr.vmem [resolvable:$true] %s1067_s28 }
 0x1bd   :  { %v767_v24 = vadd.f32 %v766_v22, %v718_v21  ;;  %v797_v33 = vmax.f32 %v667_v28, 0.0 }
 0x1bf   :  { %v800_v26 = vmax.f32 %v767_v24, 0.0 }
 0x1c0   :  { %v619_v27 = vpop.f32.mrf.mxu2 }
 0x1c1   :  { %v816_v29 = vpack.c.bf16 %v800_v26, %v798_v25  ;;  %v620_v30 = vadd.f32 %v619_v27, %v1683_v51  ;;  %v668_v31 = vpop.f32.mrf.mxu3 }
 0x1c3   :  { %v669_v32 = vadd.f32 %v668_v31, %v620_v30  ;;  %1041 = vmatmul.bf16.gmra.mxu3 %v816_v29 }
 0x1c5   :  { %v799_v34 = vmax.f32 %v669_v32, 0.0 }
 0x1c7   :  { %v815_v35 = vpack.c.bf16 %v799_v34, %v797_v33 }
 0x1c9   :  { %992 = vmatmul.bf16.gmra.mxu2 %v815_v35 }
 0x1d6   :  { %v1007_v36 = vpop.f32.mrf.mxu3 }
 0x1dc   :  { %v958_v37 = vpop.f32.mrf.mxu2 }
 0x1dd   :  { %v959_v38 = vadd.f32 %v1719_v48, %v958_v37 }
 0x1de   :  { %v1009_v39 = vpop.f32.mrf.mxu3 }
 0x1df   :  { %v1008_v40 = vadd.f32 %v1007_v36, %v959_v38 }
 0x1e1   :  { %1047 = vst [vmem:[#allocation11] sm:$0xff] %v1008_v40 }
 0x1e4   :  { %v960_v51 = vpop.f32.mrf.mxu2 }
 0x1e5   :  { %v961_v41 = vadd.f32 %v1719_v48, %v960_v51 }
 0x1e6   :  { %v1012_v42 = vpop.f32.mrf.mxu3 }
 0x1e7   :  { %v1010_v45 = vadd.f32 %v1009_v39, %v961_v41 }
 0x1e9   :  { %1048 = vst [vmem:[#allocation11 + $0x8] sm:$0xff] %v1010_v45 }
 0x1ec   :  { %v963_v46 = vpop.f32.mrf.mxu2 }
 0x1ed   :  { %v964_v43 = vadd.f32 %v1719_v48, %v963_v46 }
 0x1ee   :  { %v1014_v47 = vpop.f32.mrf.mxu3 }
 0x1ef   :  { %v1013_v49 = vadd.f32 %v1012_v42, %v964_v43 }
 0x1f1   :  { %1049 = vst [vmem:[#allocation11 + $0x10] sm:$0xff] %v1013_v49 }
 0x1f4   :  { %v965_v44 = vpop.f32.mrf.mxu2 }
 0x1f5   :  { %v966_v50 = vadd.f32 %v1719_v48, %v965_v44 }
 0x1f6   :  { %v1017_v52 = vpop.f32.mrf.mxu3 }
 0x1f7   :  { %v1015_v53 = vadd.f32 %v1014_v47, %v966_v50 }
 0x1f9   :  { %1050 = vst [vmem:[#allocation11 + $0x18] sm:$0xff] %v1015_v53 }
 0x1fc   :  { %v968_v54 = vpop.f32.mrf.mxu2 }
 0x1fd   :  { %v969_v55 = vadd.f32 %v1719_v48, %v968_v54 }
 0x1fe   :  { %v1019_v56 = vpop.f32.mrf.mxu3 }
 0x1ff   :  { %v1018_v57 = vadd.f32 %v1017_v52, %v969_v55 }
 0x201   :  { %1051 = vst [vmem:[#allocation11 + $0x20] sm:$0xff] %v1018_v57 }
 0x204   :  { %v970_v58 = vpop.f32.mrf.mxu2 }
 0x205   :  { %v971_v59 = vadd.f32 %v1719_v48, %v970_v58 }
 0x206   :  { %v1022_v60 = vpop.f32.mrf.mxu3 }
 0x207   :  { %v1020_v61 = vadd.f32 %v1019_v56, %v971_v59 }
 0x209   :  { %1052 = vst [vmem:[#allocation11 + $0x28] sm:$0xff] %v1020_v61 }
 0x20c   :  { %v973_v62 = vpop.f32.mrf.mxu2 }
 0x20d   :  { %v974_v63 = vadd.f32 %v1719_v48, %v973_v62 }
 0x20e   :  { %v1024_v0 = vpop.f32.mrf.mxu3 }
 0x20f   :  { %v1023_v1 = vadd.f32 %v1022_v60, %v974_v63 }
 0x211   :  { %1053 = vst [vmem:[#allocation11 + $0x30] sm:$0xff] %v1023_v1 }
 0x214   :  { %v975_v2 = vpop.f32.mrf.mxu2 }
 0x215   :  { %v976_v3 = vadd.f32 %v1719_v48, %v975_v2 }
 0x216   :  { %v1027_v4 = vpop.f32.mrf.mxu3 }
 0x217   :  { %v1025_v5 = vadd.f32 %v1024_v0, %v976_v3 }
 0x219   :  { %1054 = vst [vmem:[#allocation11 + $0x38] sm:$0xff] %v1025_v5 }
 0x21c   :  { %v978_v6 = vpop.f32.mrf.mxu2 }
 0x21d   :  { %v979_v7 = vadd.f32 %v1719_v48, %v978_v6 }
 0x21e   :  { %v1029_v8 = vpop.f32.mrf.mxu3 }
 0x21f   :  { %v1028_v9 = vadd.f32 %v1027_v4, %v979_v7 }
 0x221   :  { %1055 = vst [vmem:[#allocation11 + $0x40] sm:$0xff] %v1028_v9 }
 0x224   :  { %v980_v10 = vpop.f32.mrf.mxu2 }
 0x225   :  { %v981_v11 = vadd.f32 %v1719_v48, %v980_v10 }
 0x226   :  { %v1032_v12 = vpop.f32.mrf.mxu3 }
 0x227   :  { %v1030_v13 = vadd.f32 %v1029_v8, %v981_v11 }
 0x229   :  { %1056 = vst [vmem:[#allocation11 + $0x48] sm:$0xff] %v1030_v13 }
 0x22c   :  { %v983_v14 = vpop.f32.mrf.mxu2 }
 0x22d   :  { %v984_v15 = vadd.f32 %v1719_v48, %v983_v14 }
 0x22e   :  { %v1034_v16 = vpop.f32.mrf.mxu3 }
 0x22f   :  { %v1033_v17 = vadd.f32 %v1032_v12, %v984_v15 }
 0x231   :  { %1057 = vst [vmem:[#allocation11 + $0x50] sm:$0xff] %v1033_v17 }
 0x234   :  { %v985_v18 = vpop.f32.mrf.mxu2 }
 0x235   :  { %v986_v19 = vadd.f32 %v1719_v48, %v985_v18 }
 0x236   :  { %v1037_v21 = vpop.f32.mrf.mxu3 }
 0x237   :  { %v1035_v20 = vadd.f32 %v1034_v16, %v986_v19 }
 0x239   :  { %1058 = vst [vmem:[#allocation11 + $0x58] sm:$0xff] %v1035_v20 }
 0x23c   :  { %v988_v22 = vpop.f32.mrf.mxu2 }
 0x23d   :  { %v989_v23 = vadd.f32 %v1719_v48, %v988_v22 }
 0x23e   :  { %v1039_v25 = vpop.f32.mrf.mxu3 }
 0x23f   :  { %v1038_v24 = vadd.f32 %v1037_v21, %v989_v23 }
 0x241   :  { %1059 = vst [vmem:[#allocation11 + $0x60] sm:$0xff] %v1038_v24 }
 0x244   :  { %v990_v26 = vpop.f32.mrf.mxu2 }
 0x245   :  { %v991_v27 = vadd.f32 %v1719_v48, %v990_v26 }
 0x246   :  { %v1042_v29 = vpop.f32.mrf.mxu3 }
 0x247   :  { %v1040_v28 = vadd.f32 %v1039_v25, %v991_v27 }
 0x249   :  { %1060 = vst [vmem:[#allocation11 + $0x68] sm:$0xff] %v1040_v28 }
 0x24c   :  { %v993_v30 = vpop.f32.mrf.mxu2 }
 0x24d   :  { %v994_v31 = vadd.f32 %v1719_v48, %v993_v30 }
 0x24e   :  { %v1044_v35 = vpop.f32.mrf.mxu3 }
 0x24f   :  { %v1043_v32 = vadd.f32 %v1042_v29, %v994_v31 }
 0x251   :  { %1061 = vst [vmem:[#allocation11 + $0x70] sm:$0xff] %v1043_v32 }
 0x254   :  { %v995_v33 = vpop.f32.mrf.mxu2 }
 0x255   :  { %v996_v34 = vadd.f32 %v1719_v48, %v995_v33 }
 0x257   :  { %v1045_v36 = vadd.f32 %v1044_v35, %v996_v34 }
 0x259   :  { %1062 = vst [vmem:[#allocation11 + $0x78] sm:$0xff] %v1045_v36 }
 0x25a   :  { %1075 = dma.vmem_to_hbm [thread:$0]  %s1068_s28, 2048, %s1070_s8, [#allocation4], %s1568_s9, %s1568_s9, %s1569_s10  }
 0x25b   :  { %1565 = dma.done.wait [#allocation4], 2048  }
 0x25c   :  { %1566 = vsyncadd [#allocation4], 4294965248 }
 0x25d   :  { %1080 = vsyncpa [#allocation3], 1 }
 0x25e   :  { %1081 = vsyncpa [#allocation6], 1 }
 0x25f   :  { %1082 = vsyncpa [#allocation9], 1 }
 0x260   :  { %1083 = vsyncpa [#allocation4], 1 }

</bundles_post_ra>
